<compile_context>
chip_gen: v7x
topology: tpu7x:2x2x1
jax: 0.10.0
libtpu: 0.0.40
codegen_flags: <defaults>
</compile_context>

<pallas_src>
import numpy as np
import jax
import jax.numpy as jnp
from jax.experimental import pallas as pl
from jax.experimental.pallas import tpu as pltpu

# ---- sizes (small, consistent with the module: pk_rows == pk_cols so the
# ---- (2, rows*cols, rows*rows) adjacency in __init__ is square) -------------
PK_ROWS = 4
PK_COLS = 4
N_PK = PK_ROWS * PK_COLS          # 16 prediction kernels
NEIGH = 8                         # 8 lateral directions
DYN = 1                           # pk dynamic in/out size
LAT = 1                           # pk lateral in/out size (per direction)
PRE = 4                           # lateral pre-layer size
HID = 16                          # LSTM hidden size

# packed-layout constants
P_ROWS, P_COLS = 64, 64           # parameter slab
S_COLS = 64                       # state slab lanes (41 used)
OUT_COLS = 128                    # output slab lanes (42 used; lane-dense store)


# ---------------------------------------------------------------------------
# Host-side constants — mirrors KernelNetwork.__init__ exactly, then restacks
# the per-direction adjacency for a single-matmul gather.
# ---------------------------------------------------------------------------
def build_lateral_constants(pk_rows, pk_cols):
    n = pk_rows * pk_cols
    adj = np.zeros((2, n, n), dtype=np.float32)
    direction_dict = {'top': 1, 'left top': 2, 'left': 3, 'left bottom': 4,
                      'bottom': 5, 'right bottom': 6, 'right': 7, 'right top': 8}
    pk_id = 0
    for r in range(pk_rows):
        for c in range(pk_cols):
            neighbors = {'top': [r - 1, c], 'left top': [r - 1, c - 1],
                         'left': [r, c - 1], 'left bottom': [r + 1, c - 1],
                         'bottom': [r + 1, c], 'right bottom': [r + 1, c + 1],
                         'right': [r, c + 1], 'right top': [r - 1, c + 1]}
            for nd in neighbors:
                nr, nc = neighbors[nd]
                if 0 <= nr < pk_rows and 0 <= nc < pk_cols:
                    j = nr * pk_cols + nc
                    adj[0, pk_id, j] = 1
                    adj[1, pk_id, j] = direction_dict[nd]
            pk_id += 1

    # per-direction one-hot adjacency: adj_dir[d, i, j] = 1 iff edge i<-j has dir d+1
    adj_dir = np.zeros((NEIGH, n, n), dtype=np.float32)
    for d in range(NEIGH):
        adj_dir[d] = np.where((adj[0] == 1) & (adj[1] == d + 1), 1.0, 0.0)

    # stacked gather operands (direction-major lane blocks of width n):
    #   m_adj[i, d*n + j] = adj_dir[d, i, j]          (16, 128)
    #   c_sel[d*n + j, d'] = (d == d')                (128, 8)
    #   mask[i, d] = 1 if PK i has a neighbor in direction d
    m_adj = np.zeros((n, NEIGH * n), dtype=np.float32)
    c_sel = np.zeros((NEIGH * n, NEIGH), dtype=np.float32)
    mask = np.zeros((n, NEIGH), dtype=np.float32)
    for d in range(NEIGH):
        m_adj[:, d * n:(d + 1) * n] = adj_dir[d]
        c_sel[d * n:(d + 1) * n, d] = 1.0
        mask[:, d] = adj_dir[d].sum(axis=1)
    return adj, m_adj, c_sel, mask


# ---------------------------------------------------------------------------
# Host-side packing of parameters / state into lane-dense slabs.
# Parameter slab layout (rows x 64 lanes, f32), all block starts 8-aligned:
#   rows  0:21         : fused gate weight [dyn(1) | pre(4) | h(16)] x (i|f|g|o)*16
#   row   24           : fused gate bias (64)
#   rows 32:40, 0:4    : w_pre (8,4)
#   row  40,    0:4    : b_pre
#   row  41,    0:2    : [b_dyn, b_lat]
#   rows 48:64, 0:2    : [w_dyn | w_lat] (16,2)
#   rows 48:64, 8:16   : lateral has-neighbor mask (16,8)
# ---------------------------------------------------------------------------
def pack_params(params, mask):
    (w_pre_t, b_pre, wih_d_t, wih_p_t, whh_t, b_gates,
     w_dyn_t, b_dyn, w_lat_t, b_lat) = params
    slab = jnp.zeros((P_ROWS, P_COLS), jnp.float32)
    w_g = jnp.concatenate([wih_d_t, wih_p_t, whh_t], axis=0)        # (21, 64)
    slab = slab.at[0:21, :].set(w_g)
    slab = slab.at[24:25, :].set(b_gates)
    slab = slab.at[32:40, 0:4].set(w_pre_t)
    slab = slab.at[40:41, 0:4].set(b_pre)
    slab = slab.at[41:42, 0:2].set(jnp.concatenate([b_dyn, b_lat], axis=1))
    slab = slab.at[48:64, 0:2].set(jnp.concatenate([w_dyn_t, w_lat_t], axis=1))
    slab = slab.at[48:64, 8:16].set(jnp.asarray(mask, jnp.float32))
    return slab


def pack_state(dyn_in, lat_in, h, c):
    used = DYN + NEIGH + 2 * HID                                    # 41
    pad = jnp.zeros((N_PK, S_COLS - used), jnp.float32)
    # cols: 0:1 dyn_in | 1:9 lat_in | 9:25 h | 25:41 c | pad
    return jnp.concatenate([dyn_in, lat_in, h, c, pad], axis=1)


# ---------------------------------------------------------------------------
# Pallas kernel: lateral exchange + full PK network forward (one step).
# ---------------------------------------------------------------------------
def kernel_net_kernel(madj_ref, csel_ref, latrow_ref, p_ref, s_ref, out_ref):
    f32 = jnp.float32
    P = p_ref[...]                                    # (64, 64) parameter slab
    S = s_ref[...]                                    # (16, 64) state slab
    dyn_in = S[:, 0:DYN]                              # (16, 1)
    lat_in_prev = S[:, DYN:DYN + NEIGH]               # (16, 8)
    h_prev = S[:, 9:9 + HID]                          # (16, 16)
    c_prev = S[:, 25:25 + HID]                        # (16, 16)

    # --- lateral gather/scatter as ONE matmul ---------------------------------
    # lat_in[i, d] = lat_out[j] for edge (i <- j, dir d+1); stale value kept
    # where no neighbor exists (matches the in-place update of the reference).
    lat_row = latrow_ref[...]                                         # (1, 16)
    lat_tiled = jnp.concatenate([lat_row] * NEIGH, axis=1)            # (1, 128)
    gathered = jnp.dot(madj_ref[...] * lat_tiled, csel_ref[...],
                       preferred_element_type=f32)                    # (16, 8)
    mask = P[48:64, 8:16]                                             # (16, 8)
    lat_in = jnp.where(mask > 0.5, gathered, lat_in_prev)             # (16, 8)

    # --- PK net: lateral pre-layer --------------------------------------------
    w_pre = P[32:40, 0:PRE]
    b_pre = P[40:41, 0:PRE]
    pre = jnp.tanh(jnp.dot(lat_in, w_pre, preferred_element_type=f32) + b_pre)

    # --- PK net: shared LSTM cell, fused gate matmul (K = 1 + 4 + 16 = 21) ----
    x = jnp.concatenate([dyn_in, pre, h_prev], axis=1)                # (16, 21)
    w_g = P[0:DYN + PRE + HID, :]                                     # (21, 64)
    b_g = P[24:25, :]                                                 # (1, 64)
    gates = jnp.dot(x, w_g, preferred_element_type=f32) + b_g         # (16, 64)
    i_g = jax.nn.sigmoid(gates[:, 0 * HID:1 * HID])
    f_g = jax.nn.sigmoid(gates[:, 1 * HID:2 * HID])
    g_g = jnp.tanh(gates[:, 2 * HID:3 * HID])
    o_g = jax.nn.sigmoid(gates[:, 3 * HID:4 * HID])
    c_new = f_g * c_prev + i_g * g_g
    h_new = o_g * jnp.tanh(c_new)

    # --- PK net: fused output heads (dyn | lat) --------------------------------
    w_h = P[48:64, 0:2]                                               # (16, 2)
    b_h = P[41:42, 0:2]                                               # (1, 2)
    heads = jnp.tanh(jnp.dot(h_new, w_h, preferred_element_type=f32) + b_h)
    dyn_out = heads[:, 0:1]
    lat_out = heads[:, 1:2]

    # --- single lane-dense output slab: 0:8 lat_in | 8:9 dyn | 9:10 lat |
    # --- 10:26 h | 26:42 c | 42:128 zero pad -----------------------------------
    pad = jnp.zeros((N_PK, OUT_COLS - (NEIGH + 2 + 2 * HID)), f32)
    out_ref[...] = jnp.concatenate([lat_in, dyn_out, lat_out, h_new, c_new, pad],
                                   axis=1)


@jax.jit
def kernel_network_forward(m_adj, c_sel, lat_out_prev, p_slab, state_slab):
    """One KernelNetwork.forward step.

    Returns (lat_in_new, dyn_out, lat_out_new, h_new, c_new)."""
    lat_row = jnp.transpose(lat_out_prev)                 # (1, N_PK) layout plumbing
    vmem = pl.BlockSpec(memory_space=pltpu.MemorySpace.VMEM)
    out = pl.pallas_call(
        kernel_net_kernel,
        out_shape=jax.ShapeDtypeStruct((N_PK, OUT_COLS), jnp.float32),
        in_specs=[vmem] * 5,
        out_specs=vmem,
    )(m_adj, c_sel, lat_row, p_slab, state_slab)
    lat_in_new = out[:, 0:NEIGH]
    dyn_out = out[:, NEIGH:NEIGH + 1]
    lat_out_new = out[:, NEIGH + 1:NEIGH + 2]
    h_new = out[:, 10:10 + HID]
    c_new = out[:, 26:26 + HID]
    return lat_in_new, dyn_out, lat_out_new, h_new, c_new


# ---------------------------------------------------------------------------
# Pure NumPy reference (identical semantics to the PyTorch forward).
# ---------------------------------------------------------------------------
def reference_forward(adj_full, dyn_in, lat_in_prev, lat_out_prev, h, c, params):
    (w_pre_t, b_pre, wih_d_t, wih_p_t, whh_t, b_gates,
     w_dyn_t, b_dyn, w_lat_t, b_lat) = [np.asarray(p) for p in params]
    adj0, adj1 = adj_full[0], adj_full[1]
    mult = adj0 * lat_out_prev.T
    pos0, pos1 = np.where(adj0 == 1)
    pos2 = (adj1[pos0, pos1] - 1).astype(np.int64)
    lat_in = lat_in_prev.copy()
    lat_in[pos0, pos2] = mult[pos0, pos1]

    def sigmoid(x):
        return 1.0 / (1.0 + np.exp(-x))

    pre = np.tanh(lat_in @ w_pre_t + b_pre)
    gates = dyn_in @ wih_d_t + pre @ wih_p_t + h @ whh_t + b_gates
    i = sigmoid(gates[:, :HID])
    f = sigmoid(gates[:, HID:2 * HID])
    g = np.tanh(gates[:, 2 * HID:3 * HID])
    o = sigmoid(gates[:, 3 * HID:])
    c_new = f * c + i * g
    h_new = o * np.tanh(c_new)
    dyn_out = np.tanh(h_new @ w_dyn_t + b_dyn)
    lat_out = np.tanh(h_new @ w_lat_t + b_lat)
    return lat_in, dyn_out, lat_out, h_new, c_new


if __name__ == "__main__":
    adj_full, m_adj_np, c_sel_np, mask_np = build_lateral_constants(PK_ROWS, PK_COLS)
    m_adj = jnp.asarray(m_adj_np)
    c_sel = jnp.asarray(c_sel_np)

    key = jax.random.PRNGKey(0)
    ks = jax.random.split(key, 12)

    def init(k, shape, scale=0.1):
        return scale * jax.random.normal(k, shape, dtype=jnp.float32)

    # Deterministic synthetic parameters (weights stored pre-transposed: (in, out)).
    params = (
        init(ks[0], (NEIGH * LAT, PRE)),    # w_pre_t
        init(ks[1], (1, PRE)),              # b_pre
        init(ks[2], (DYN, 4 * HID)),        # w_ih (dyn part)
        init(ks[3], (PRE, 4 * HID)),        # w_ih (pre part)
        init(ks[4], (HID, 4 * HID)),        # w_hh
        init(ks[5], (1, 4 * HID)),          # b_ih + b_hh combined
        init(ks[6], (HID, DYN)),            # w_dyn
        init(ks[7], (1, DYN)),              # b_dyn
        init(ks[8], (HID, LAT)),            # w_lat
        init(ks[9], (1, LAT)),              # b_lat
    )
    p_slab = pack_params(params, mask_np)   # one-time host packing (weights constant)

    # State / inputs (one forward step).
    dyn_in = jax.random.normal(ks[10], (N_PK, DYN), dtype=jnp.float32)
    lat_out_prev = jnp.tanh(jax.random.normal(ks[11], (N_PK, LAT), dtype=jnp.float32))
    lat_in_prev = jnp.zeros((N_PK, NEIGH), dtype=jnp.float32)
    h_prev = jnp.zeros((N_PK, HID), dtype=jnp.float32)
    c_prev = jnp.zeros((N_PK, HID), dtype=jnp.float32)
    state_slab = pack_state(dyn_in, lat_in_prev, h_prev, c_prev)

    outs = kernel_network_forward(m_adj, c_sel, lat_out_prev, p_slab, state_slab)
    outs = jax.block_until_ready(outs)

    refs = reference_forward(adj_full, np.asarray(dyn_in), np.asarray(lat_in_prev),
                             np.asarray(lat_out_prev), np.asarray(h_prev),
                             np.asarray(c_prev), params)
    for got, ref in zip(outs, refs):
        np.testing.assert_allclose(np.asarray(got), ref, rtol=1e-3, atol=1e-3)

    print("KERNEL_OK")
</pallas_src>

<mosaic_0001>
module attributes {stable_mosaic.version = 11 : i64} {
  func.func @kernel_net_kernel(%arg0: memref<16x128xf32, #tpu.memory_space<vmem>>, %arg1: memref<128x8xf32, #tpu.memory_space<vmem>>, %arg2: memref<1x16xf32, #tpu.memory_space<vmem>>, %arg3: memref<64x64xf32, #tpu.memory_space<vmem>>, %arg4: memref<16x64xf32, #tpu.memory_space<vmem>>, %arg5: memref<16x128xf32, #tpu.memory_space<vmem>>) attributes {dimension_semantics = [], scalar_prefetch = 0 : i64, scratch_operands = 0 : i64, tpu.core_type = #tpu.core_type<tc>} {
    %c0 = arith.constant 0 : index
    %c0_0 = arith.constant 0 : index
    %0 = vector.load %arg3[%c0, %c0_0] : memref<64x64xf32, #tpu.memory_space<vmem>>, vector<64x64xf32>
    %c0_1 = arith.constant 0 : index
    %c0_2 = arith.constant 0 : index
    %1 = vector.load %arg4[%c0_1, %c0_2] : memref<16x64xf32, #tpu.memory_space<vmem>>, vector<16x64xf32>
    %2 = vector.extract_strided_slice %1 {offsets = [0, 0], sizes = [16, 1], strides = [1, 1]} : vector<16x64xf32> to vector<16x1xf32>
    %3 = vector.extract_strided_slice %1 {offsets = [0, 1], sizes = [16, 8], strides = [1, 1]} : vector<16x64xf32> to vector<16x8xf32>
    %4 = vector.extract_strided_slice %1 {offsets = [0, 9], sizes = [16, 16], strides = [1, 1]} : vector<16x64xf32> to vector<16x16xf32>
    %5 = vector.extract_strided_slice %1 {offsets = [0, 25], sizes = [16, 16], strides = [1, 1]} : vector<16x64xf32> to vector<16x16xf32>
    %c0_3 = arith.constant 0 : index
    %c0_4 = arith.constant 0 : index
    %6 = vector.load %arg2[%c0_3, %c0_4] : memref<1x16xf32, #tpu.memory_space<vmem>>, vector<1x16xf32>
    %7 = tpu.concatenate %6, %6, %6, %6, %6, %6, %6, %6 in 1 : vector<1x16xf32>, vector<1x16xf32>, vector<1x16xf32>, vector<1x16xf32>, vector<1x16xf32>, vector<1x16xf32>, vector<1x16xf32>, vector<1x16xf32> -> vector<1x128xf32>
    %c0_5 = arith.constant 0 : index
    %c0_6 = arith.constant 0 : index
    %8 = vector.load %arg0[%c0_5, %c0_6] : memref<16x128xf32, #tpu.memory_space<vmem>>, vector<16x128xf32>
    %9 = vector.broadcast %7 : vector<1x128xf32> to vector<16x128xf32>
    %10 = arith.mulf %8, %9 : vector<16x128xf32>
    %c0_7 = arith.constant 0 : index
    %c0_8 = arith.constant 0 : index
    %11 = vector.load %arg1[%c0_7, %c0_8] : memref<128x8xf32, #tpu.memory_space<vmem>>, vector<128x8xf32>
    %cst = arith.constant dense<0.000000e+00> : vector<16x8xf32>
    %12 = tpu.matmul %10, %11, %cst {dimension_numbers = #tpu.dot_dimension_numbers<[1], [0], [0], [1], [0, 0, 1, 1], [], []>} : vector<16x128xf32>, vector<128x8xf32>, vector<16x8xf32> -> vector<16x8xf32>
    %13 = vector.extract_strided_slice %0 {offsets = [48, 8], sizes = [16, 8], strides = [1, 1]} : vector<64x64xf32> to vector<16x8xf32>
    %cst_9 = arith.constant 5.000000e-01 : f32
    %14 = vector.broadcast %cst_9 : f32 to vector<16x8xf32>
    %15 = arith.cmpf ogt, %13, %14 : vector<16x8xf32>
    %16 = arith.select %15, %12, %3 : vector<16x8xi1>, vector<16x8xf32>
    %17 = vector.extract_strided_slice %0 {offsets = [32, 0], sizes = [8, 4], strides = [1, 1]} : vector<64x64xf32> to vector<8x4xf32>
    %18 = vector.extract_strided_slice %0 {offsets = [40, 0], sizes = [1, 4], strides = [1, 1]} : vector<64x64xf32> to vector<1x4xf32>
    %cst_10 = arith.constant dense<0.000000e+00> : vector<16x4xf32>
    %19 = tpu.matmul %16, %17, %cst_10 {dimension_numbers = #tpu.dot_dimension_numbers<[1], [0], [0], [1], [0, 0, 1, 1], [], []>} : vector<16x8xf32>, vector<8x4xf32>, vector<16x4xf32> -> vector<16x4xf32>
    %20 = vector.broadcast %18 : vector<1x4xf32> to vector<16x4xf32>
    %21 = arith.addf %19, %20 : vector<16x4xf32>
    %22 = math.tanh %21 : vector<16x4xf32>
    %23 = tpu.concatenate %2, %22, %4 in 1 : vector<16x1xf32>, vector<16x4xf32>, vector<16x16xf32> -> vector<16x21xf32>
    %24 = vector.extract_strided_slice %0 {offsets = [0, 0], sizes = [21, 64], strides = [1, 1]} : vector<64x64xf32> to vector<21x64xf32>
    %25 = vector.extract_strided_slice %0 {offsets = [24, 0], sizes = [1, 64], strides = [1, 1]} : vector<64x64xf32> to vector<1x64xf32>
    %cst_11 = arith.constant dense<0.000000e+00> : vector<16x64xf32>
    %26 = tpu.matmul %23, %24, %cst_11 {dimension_numbers = #tpu.dot_dimension_numbers<[1], [0], [0], [1], [0, 0, 1, 1], [], []>} : vector<16x21xf32>, vector<21x64xf32>, vector<16x64xf32> -> vector<16x64xf32>
    %27 = vector.broadcast %25 : vector<1x64xf32> to vector<16x64xf32>
    %28 = arith.addf %26, %27 : vector<16x64xf32>
    %29 = vector.extract_strided_slice %28 {offsets = [0, 0], sizes = [16, 16], strides = [1, 1]} : vector<16x64xf32> to vector<16x16xf32>
    %30 = arith.negf %29 : vector<16x16xf32>
    %31 = math.exp %30 : vector<16x16xf32>
    %cst_12 = arith.constant 1.000000e+00 : f32
    %32 = vector.broadcast %cst_12 : f32 to vector<16x16xf32>
    %33 = arith.addf %32, %31 : vector<16x16xf32>
    %34 = arith.divf %32, %33 : vector<16x16xf32>
    %35 = vector.extract_strided_slice %28 {offsets = [0, 16], sizes = [16, 16], strides = [1, 1]} : vector<16x64xf32> to vector<16x16xf32>
    %36 = arith.negf %35 : vector<16x16xf32>
    %37 = math.exp %36 : vector<16x16xf32>
    %cst_13 = arith.constant 1.000000e+00 : f32
    %38 = vector.broadcast %cst_13 : f32 to vector<16x16xf32>
    %39 = arith.addf %38, %37 : vector<16x16xf32>
    %40 = arith.divf %38, %39 : vector<16x16xf32>
    %41 = vector.extract_strided_slice %28 {offsets = [0, 32], sizes = [16, 16], strides = [1, 1]} : vector<16x64xf32> to vector<16x16xf32>
    %42 = math.tanh %41 : vector<16x16xf32>
    %43 = vector.extract_strided_slice %28 {offsets = [0, 48], sizes = [16, 16], strides = [1, 1]} : vector<16x64xf32> to vector<16x16xf32>
    %44 = arith.negf %43 : vector<16x16xf32>
    %45 = math.exp %44 : vector<16x16xf32>
    %cst_14 = arith.constant 1.000000e+00 : f32
    %46 = vector.broadcast %cst_14 : f32 to vector<16x16xf32>
    %47 = arith.addf %46, %45 : vector<16x16xf32>
    %48 = arith.divf %46, %47 : vector<16x16xf32>
    %49 = arith.mulf %40, %5 : vector<16x16xf32>
    %50 = arith.mulf %34, %42 : vector<16x16xf32>
    %51 = arith.addf %49, %50 : vector<16x16xf32>
    %52 = math.tanh %51 : vector<16x16xf32>
    %53 = arith.mulf %48, %52 : vector<16x16xf32>
    %54 = vector.extract_strided_slice %0 {offsets = [48, 0], sizes = [16, 2], strides = [1, 1]} : vector<64x64xf32> to vector<16x2xf32>
    %55 = vector.extract_strided_slice %0 {offsets = [41, 0], sizes = [1, 2], strides = [1, 1]} : vector<64x64xf32> to vector<1x2xf32>
    %cst_15 = arith.constant dense<0.000000e+00> : vector<16x2xf32>
    %56 = tpu.matmul %53, %54, %cst_15 {dimension_numbers = #tpu.dot_dimension_numbers<[1], [0], [0], [1], [0, 0, 1, 1], [], []>} : vector<16x16xf32>, vector<16x2xf32>, vector<16x2xf32> -> vector<16x2xf32>
    %57 = vector.broadcast %55 : vector<1x2xf32> to vector<16x2xf32>
    %58 = arith.addf %56, %57 : vector<16x2xf32>
    %59 = math.tanh %58 : vector<16x2xf32>
    %60 = vector.extract_strided_slice %59 {offsets = [0, 0], sizes = [16, 1], strides = [1, 1]} : vector<16x2xf32> to vector<16x1xf32>
    %61 = vector.extract_strided_slice %59 {offsets = [0, 1], sizes = [16, 1], strides = [1, 1]} : vector<16x2xf32> to vector<16x1xf32>
    %cst_16 = arith.constant 0.000000e+00 : f32
    %62 = vector.broadcast %cst_16 : f32 to vector<16x86xf32>
    %63 = tpu.concatenate %16, %60, %61, %53, %51, %62 in 1 : vector<16x8xf32>, vector<16x1xf32>, vector<16x1xf32>, vector<16x16xf32>, vector<16x16xf32>, vector<16x86xf32> -> vector<16x128xf32>
    %c0_17 = arith.constant 0 : index
    %c0_18 = arith.constant 0 : index
    %64 = vector.load %arg5[%c0_17, %c0_18] : memref<16x128xf32, #tpu.memory_space<vmem>>, vector<16x128xf32>
    tpu.vector_store %arg5[%c0_17, %c0_18], %63 {strides = array<i32>} : memref<16x128xf32, #tpu.memory_space<vmem>>, vector<16x128xf32>,
    return
  }
}

</mosaic_0001>

<bundles_post_ra>
// kernel: kernel_network_forward.1
= control target key start
LH: loop header
LB: loop body
LE: loop exit
PB: predicated region body
PF: predicated region fallthrough
CT: control target
= control target key end

     0   :  { %v32_v0 = vlaneseq  ;;  %s755_s10 = smov 16   ;;  %s756_s11 = smov 48   ;;  %vm57_vm0 = vcmask 130048   ;;  %vm59_vm1 = vcmask 261120   ;;  %vm61_vm2 = vcmask 392192   ;;  %s958_s2 = inlined_call_operand.vmem [shape: f32[1,16], index: 2, kind: input, shape index: {}]   ;;  %s959_s1 = inlined_call_operand.vmem [shape: f32[128,8], index: 1, kind: input, shape index: {}]   ;;  %s960_s0 = inlined_call_operand.vmem [shape: f32[16,128], index: 0, kind: input, shape index: {}]   ;;  %s961_s4 = inlined_call_operand.vmem [shape: f32[16,64], index: 4, kind: input, shape index: {}]   ;;  %s962_s3 = inlined_call_operand.vmem [shape: f32[64,64], index: 3, kind: input, shape index: {}]   ;;  %s963_s5 = inlined_call_operand.vmem [shape: f32[16,128], index: 5, kind: output, shape index: {}]  }
   0x1   :  { %v79_v1 = vld [vmem:[%s959_s1] sm:$0xff]  ;;  %v80_v2 = vld [vmem:[%s959_s1 + $0x8] sm:$0xff]  ;;  %v81_v5 = vld [vmem:[%s959_s1 + $0x10] sm:$0xff]  ;;  %s757_s16 = smov 32   ;;  %s758_s17 = smov 64   ;;  %vm63_vm3 = vcmask 523264  }
   0x2   :  { %v806_v3 = vshrl.u32 %v32_v0, 7  ;;  %v676_v4 = vpack.c.bf16 %v80_v2, %v79_v1  ;;  %v82_v6 = vld [vmem:[%s959_s1 + $0x18] sm:$0xff]  ;;  %v30_v7 = vld [vmem:[%s958_s2] sm:$0x1]  ;;  %v84_v10 = vld [vmem:[%s959_s1 + $0x28] sm:$0xff]  ;;  %s759_s22 = smov 80  }
   0x3   :  { %v680_v8 = vpack.c.bf16 %v82_v6, %v81_v5  ;;  %v83_v9 = vld [vmem:[%s959_s1 + $0x20] sm:$0xff]  ;;  %v85_v14 = vld [vmem:[%s959_s1 + $0x30] sm:$0xff]  ;;  %v86_v15 = vld [vmem:[%s959_s1 + $0x38] sm:$0xff]  ;;  %s760_s23 = smov 96   ;;  %s761_s28 = smov 112   ;;  %vm65_vm4 = vcmask 654336  }
   0x4   :  { %v824_v11 = vsub.s32 0, %v806_v3  ;;  %677 = vmatprep.subr.bf16.mxu0 %v676_v4  ;;  %v684_v13 = vpack.c.bf16 %v84_v10, %v83_v9  ;;  %v688_v16 = vpack.c.bf16 %v86_v15, %v85_v14  ;;  %v87_v17 = vld [vmem:[%s959_s1 + $0x40] sm:$0xff]  ;;  %v88_v18 = vld [vmem:[%s959_s1 + $0x48] sm:$0xff]  ;;  %v89_v20 = vld [vmem:[%s959_s1 + $0x50] sm:$0xff]  ;;  %vm67_vm5 = vcmask 785408   ;;  %s762_s13 = smov 7  }
   0x5   :  { %679 = vmatpush3.bf16.msra.mxu0 %v676_v4  ;;  %v692_v19 = vpack.c.bf16 %v88_v18, %v87_v17  ;;  %v90_v21 = vld [vmem:[%s959_s1 + $0x58] sm:$0xff]  ;;  %v91_v23 = vld [vmem:[%s959_s1 + $0x60] sm:$0xff]  ;;  %v92_v24 = vld [vmem:[%s959_s1 + $0x68] sm:$0xff]  ;;  %vm69_vm6 = vcmask 916480   ;;  %s764_s24 = smov 120   ;;  %vm200_vm9 = vcmask 64512  }
   0x6   :  { %v35_v12 = vrot.slane %v30_v7, %v824_v11  ;;  %681 = vmatprep.subr.bf16.mxu0 %v680_v8  ;;  %v696_v22 = vpack.c.bf16 %v90_v21, %v89_v20  ;;  %v700_v25 = vpack.c.bf16 %v92_v24, %v91_v23  ;;  %v93_v26 = vld [vmem:[%s959_s1 + $0x70] sm:$0xff]  ;;  %v94_v27 = vld [vmem:[%s959_s1 + $0x78] sm:$0xff]  ;;  %v71_v43 = vld [vmem:[%s960_s0] sm:$0xff]  ;;  %vm313_vm10 = vcmask 1044480   ;;  %s765_s1 = smov 1   ;;  %s766_s2 = smov 124  }
   0x7   :  { %v704_v28 = vpack.c.bf16 %v94_v27, %v93_v26  ;;  %v72_v44 = vld [vmem:[%s960_s0 + $0x8] sm:$0xff]  ;;  %v872_v48 = vld [vmem:[%s961_s4] sm:$0xff]  ;;  %s763_s0 = smov 8   ;;  %v889_v53 = vld [vmem:[%s962_s3 + $0x30] sm:$0xff]  ;;  %vm296_vm11 = vcmask 7168   ;;  %vm299_vm12 = vcmask 39936  }
   0x8   :  { %36 = vrot.lane.b32.xlu0 %v35_v12, %s755_s10  ;;  %42 = vrot.lane.b32.xlu1 %v35_v12, %s756_s11  ;;  %v878_v49 = vld [vmem:[%s961_s4 + $0x8] sm:$0xff]  ;;  %v24_v52 = vld [vmem:[%s962_s3 + $0x20] sm:$0xff]  ;;  %vm170_vm7 = vcmp.gt.f32.partialorder %v889_v53, 0.5  ;;  %vm306_vm13 = vcmask 171008   ;;  %s767_s11 = smov 119   ;;  %vm563_vm14 = vcmask 72704  }
   0x9   :  { %683 = vmatpush3.bf16.msra.mxu0 %v680_v8  ;;  %655 = vmatprep.subr.mxu1 %v24_v52  ;;  %v895_v55 = vld [vmem:[%s962_s3 + $0x38] sm:$0xff]  ;;  %v909_v63 = vld [vmem:[%s962_s3 + $0x28] sm:$0xff]  ;;  %v20_v1 = vld [vmem:[%s962_s3] sm:$0xff]  ;;  %vm566_vm15 = vcmask 80896  }
   0xa   :  { %685 = vmatprep.subr.bf16.mxu0 %v684_v13  ;;  %656 = vmatpush3.msra.mxu1 %v24_v52  ;;  %vm171_vm8 = vcmp.gt.f32.partialorder %v895_v55, 0.5  ;;  %v193_v0 = vrot.slane %v909_v63, %v824_v11  ;;  %v21_v2 = vld [vmem:[%s962_s3 + $0x8] sm:$0xff]  ;;  %v22_v9 = vld [vmem:[%s962_s3 + $0x10] sm:$0xff]  ;;  %v23_v21 = vld [vmem:[%s962_s3 + $0x18] sm:$0xff]  ;;  %s768_s3 = smov 90  }
   0xb   :  { %v708_v5 = vpack.c.bf16 %v21_v2, %v20_v1 }
   0xc   :  { %39 = vrot.lane.b32.xlu0 %v35_v12, %s757_s16  ;;  %45 = vrot.lane.b32.xlu1 %v35_v12, %s758_s17 }
   0xd   :  { %687 = vmatpush3.bf16.msra.mxu0 %v684_v13  ;;  %709 = vmatprep.subr.bf16.mxu1 %v708_v5 }
   0xe   :  { %689 = vmatprep.subr.bf16.mxu0 %v688_v16 }
  0x10   :  { %48 = vrot.lane.b32.xlu0 %v35_v12, %s759_s22  ;;  %51 = vrot.lane.b32.xlu1 %v35_v12, %s760_s23 }
  0x11   :  { %691 = vmatpush3.bf16.msra.mxu0 %v688_v16 }
  0x12   :  { %693 = vmatprep.subr.bf16.mxu0 %v692_v19 }
  0x14   :  { %54 = vrot.lane.b32.xlu0 %v35_v12, %s761_s28 }
  0x15   :  { %695 = vmatpush3.bf16.msra.mxu0 %v692_v19 }
  0x16   :  { %697 = vmatprep.subr.bf16.mxu0 %v696_v22 }
  0x18   :  { %182 = vrot.lane.b32.xlu0 %v872_v48, %s762_s13 }
  0x19   :  { %699 = vmatpush3.bf16.msra.mxu0 %v696_v22  ;;  %v305_v22 = vrot.slane %v23_v21, %v824_v11 }
  0x1a   :  { %701 = vmatprep.subr.bf16.mxu0 %v700_v25 }
  0x1c   :  { %184 = vrot.lane.b32.xlu0 %v878_v49, %s762_s13 }
  0x1d   :  { %703 = vmatpush3.bf16.msra.mxu0 %v700_v25 }
  0x1e   :  { %705 = vmatprep.subr.bf16.mxu0 %v704_v28 }
  0x21   :  { %707 = vmatpush3.bf16.msra.mxu0 %v704_v28 }
  0x7a   :  { %v37_v29 = vpop.permute.xlu0 %36  ;;  %v43_v30 = vpop.permute.xlu1 %42 }
  0x7b   :  { %v58_v31 = vsel %vm57_vm0, %v30_v7, %v37_v29 }
  0x7e   :  { %v40_v32 = vpop.permute.xlu0 %39  ;;  %v46_v33 = vpop.permute.xlu1 %45 }
  0x7f   :  { %v60_v34 = vsel %vm59_vm1, %v58_v31, %v40_v32  ;;  %vm572_vm1 = vcmask 343040  }
  0x80   :  { %v62_v35 = vsel %vm61_vm2, %v60_v34, %v43_v30 }
  0x81   :  { %v64_v36 = vsel %vm63_vm3, %v62_v35, %v46_v33 }
  0x82   :  { %v49_v37 = vpop.permute.xlu0 %48  ;;  %v52_v39 = vpop.permute.xlu1 %51 }
  0x83   :  { %v66_v38 = vsel %vm65_vm4, %v64_v36, %v49_v37 }
  0x84   :  { %v68_v40 = vsel %vm67_vm5, %v66_v38, %v52_v39 }
  0x86   :  { %v55_v41 = vpop.permute.xlu0 %54 }
  0x87   :  { %v70_v42 = vsel %vm69_vm6, %v68_v40, %v55_v41 }
  0x88   :  { %v76_v45 = vrot.slane %v70_v42, %v824_v11 }
  0x8a   :  { %v77_v46 = vmul.f32 %v76_v45, %v71_v43  ;;  %v78_v47 = vmul.f32 %v76_v45, %v72_v44  ;;  %v183_v54 = vpop.permute.xlu0 %182 }
  0x8c   :  { %652 = vmatprep.mubr.f32.mxu0 %v77_v46 }
  0x8d   :  { %653 = vmatmul.mubr.f32.vlgmr.msra.gmra.mrb[0].mxu0 %v78_v47 }
  0x8e   :  { %v185_v58 = vpop.permute.xlu0 %184 }
 0x160   :  { %v654_v50 = vpop.f32.mrb[0].mxu0 }
 0x161   :  { %v161_v51 = vpop.f32.mrb[1].mxu0 }
 0x162   :  { %174 = vrot.lane.b32.xlu1 %v161_v51, %s763_s0 }
 0x166   :  { %176 = vrot.lane.b32.xlu1 %v654_v50, %s763_s0 }
 0x1d4   :  { %v175_v56 = vpop.permute.xlu1 %174 }
 0x1d5   :  { %v188_v57 = vsel %vm170_vm7, %v175_v56, %v183_v54 }
 0x1d6   :  { %196 = vrot.lane.b32.xlu1 %v188_v57, %s764_s24  ;;  %v448_v57 = vsub.s32 1, %v806_v3 }
 0x1d8   :  { %v177_v59 = vpop.permute.xlu1 %176 }
 0x1d9   :  { %v189_v60 = vsel %vm171_vm8, %v177_v59, %v185_v58  ;;  %v449_v58 = vrot.slane %v909_v63, %v448_v57 }
 0x1da   :  { %198 = vrot.lane.b32.xlu0 %v189_v60, %s764_s24 }
 0x248   :  { %v898_v61 = vpop.permute.xlu1 %196 }
 0x249   :  { %657 = vmatprep.mubr.msk.f32.mxu1 %vm200_vm9, %v898_v61 }
 0x24c   :  { %v902_v62 = vpop.permute.xlu0 %198 }
 0x24d   :  { %658 = vmatmul.mubr.msk.f32.vlgmr.msra.gmra.mrb[0].mxu1 %vm200_vm9, %v902_v62 }
 0x24e   :  { %711 = vmatpush3.bf16.msra.mxu1 %v708_v5 }
 0x24f   :  { %664 = vmatprep.subr.msk.mxu1 %vm313_vm10, %v22_v9 }
 0x252   :  { %665 = vmatpush3.msk.msra.mxu1 %vm313_vm10, %v22_v9 }
 0x320   :  { %v659_v4 = vpop.f32.mrb[0].mxu1 }
 0x321   :  { %v277_v6 = vadd.f32 %v659_v4, %v193_v0  ;;  %v271_v7 = vpop.f32.mrb[1].mxu1 }
 0x322   :  { %v272_v8 = vadd.f32 %v271_v7, %v193_v0 }
 0x323   :  { %731 = vtanh.f32 %v277_v6 }
 0x324   :  { %733 = vtanh.f32 %v272_v8 }
 0x32d   :  { %v732_v10 = vpop.eup %731 }
 0x32e   :  { %v734_v12 = vpop.eup %733  ;;  %286 = vrot.lane.b32.xlu0 %v732_v10, %s765_s1 }
 0x32f   :  { %284 = vrot.lane.b32.xlu1 %v734_v12, %s765_s1 }
 0x332   :  { %292 = vrot.lane.b32.xlu0 %v878_v49, %s766_s2 }
 0x333   :  { %290 = vrot.lane.b32.xlu1 %v872_v48, %s766_s2 }
 0x3a0   :  { %v287_v13 = vpop.permute.xlu0 %286 }
 0x3a1   :  { %v285_v14 = vpop.permute.xlu1 %284  ;;  %v298_v18 = vsel %vm296_vm11, %v878_v49, %v287_v13 }
 0x3a2   :  { %v297_v16 = vsel %vm296_vm11, %v872_v48, %v285_v14 }
 0x3a4   :  { %v293_v15 = vpop.permute.xlu0 %292 }
 0x3a5   :  { %v291_v17 = vpop.permute.xlu1 %290  ;;  %v301_v20 = vsel %vm299_vm12, %v298_v18, %v293_v15 }
 0x3a6   :  { %v300_v19 = vsel %vm299_vm12, %v297_v16, %v291_v17 }
 0x3a7   :  { %666 = vmatprep.mubr.msk.f32.mxu1 %vm306_vm13, %v300_v19 }
 0x3a8   :  { %667 = vmatmul.mubr.msk.f32.vlgmr.msra.gmra.mrb[2].mxu1 %vm306_vm13, %v301_v20 }
 0x47b   :  { %v668_v23 = vpop.f32.mrb[2].mxu1 }
 0x47c   :  { %v389_v24 = vadd.f32 %v668_v23, %v305_v22  ;;  %v383_v25 = vpop.f32.mrb[3].mxu1 }
 0x47d   :  { %v384_v26 = vadd.f32 %v383_v25, %v305_v22 }
 0x47e   :  { %735 = vtanh.f32 %v389_v24  ;;  %v587_v29 = vmul.f32 -1.442695, %v389_v24 }
 0x47f   :  { %737 = vtanh.f32 %v384_v26  ;;  %v586_v30 = vmul.f32 -1.442695, %v384_v26 }
 0x480   :  { %739 = vpow2.f32 %v587_v29 }
 0x481   :  { %741 = vpow2.f32 %v586_v30 }
 0x488   :  { %v736_v27 = vpop.eup %735 }
 0x489   :  { %v738_v28 = vpop.eup %737  ;;  %418 = vrot.lane.b32.xlu0 %v736_v27, %s760_s23 }
 0x48a   :  { %416 = vrot.lane.b32.xlu1 %v738_v28, %s760_s23  ;;  %v740_v11 = vpop.eup %739 }
 0x48b   :  { %v742_v31 = vpop.eup %741  ;;  %v399_v32 = vadd.f32 1.0, %v740_v11 }
 0x48c   :  { %v398_v33 = vadd.f32 1.0, %v742_v31 }
 0x48d   :  { %408 = vrot.lane.b32.xlu0 %v878_v49, %s767_s11  ;;  %743 = vrcp.f32 %v399_v32 }
 0x48e   :  { %406 = vrot.lane.b32.xlu1 %v872_v48, %s767_s11  ;;  %745 = vrcp.f32 %v398_v33  ;;  %v712_v48 = vpack.c.bf16 %v895_v55, %v889_v53 }
 0x490   :  { %713 = vmatprep.subr.bf16.mxu1 %v712_v48 }
 0x491   :  { %715 = vmatpush3.bf16.msra.mxu1 %v712_v48 }
 0x497   :  { %v744_v34 = vpop.eup %743 }
 0x498   :  { %v746_v36 = vpop.eup %745 }
 0x4fb   :  { %v419_v35 = vpop.permute.xlu0 %418 }
 0x4fc   :  { %v423_v37 = vmul.f32 %v744_v34, %v419_v35  ;;  %v417_v38 = vpop.permute.xlu1 %416 }
 0x4fd   :  { %v422_v39 = vmul.f32 %v746_v36, %v417_v38 }
 0x4fe   :  { %428 = vrot.lane.b32.xlu0 %v423_v37, %s755_s10 }
 0x4ff   :  { %426 = vrot.lane.b32.xlu1 %v422_v39, %s755_s10  ;;  %v409_v40 = vpop.permute.xlu0 %408  ;;  %s769_s10 = smov 10  }
 0x500   :  { %v407_v41 = vpop.permute.xlu1 %406  ;;  %v413_v42 = vmul.f32 %v744_v34, %v409_v40 }
 0x501   :  { %v412_v43 = vmul.f32 %v746_v36, %v407_v41 }
 0x570   :  { %v429_v44 = vpop.permute.xlu0 %428 }
 0x571   :  { %v433_v45 = vadd.f32 %v429_v44, %v413_v42  ;;  %v427_v46 = vpop.permute.xlu1 %426 }
 0x572   :  { %v432_v47 = vadd.f32 %v427_v46, %v412_v43 }
 0x573   :  { %747 = vtanh.f32 %v433_v45 }
 0x574   :  { %749 = vtanh.f32 %v432_v47 }
 0x57d   :  { %v748_v49 = vpop.eup %747 }
 0x57e   :  { %v750_v50 = vpop.eup %749  ;;  %440 = vrot.lane.b32.xlu0 %v748_v49, %s757_s16 }
 0x57f   :  { %438 = vrot.lane.b32.xlu1 %v750_v50, %s757_s16 }
 0x5f0   :  { %v441_v51 = vpop.permute.xlu0 %440 }
 0x5f1   :  { %v445_v52 = vmul.f32 %v744_v34, %v441_v51  ;;  %v439_v54 = vpop.permute.xlu1 %438 }
 0x5f2   :  { %v444_v56 = vmul.f32 %v746_v36, %v439_v54 }
 0x5f3   :  { %454 = vrot.lane.b32.xlu0 %v445_v52, %s759_s22 }
 0x5f4   :  { %452 = vrot.lane.b32.xlu1 %v444_v56, %s759_s22 }
 0x5f7   :  { %549 = vrot.lane.b32.xlu0 %v445_v52, %s768_s3 }
 0x5f8   :  { %547 = vrot.lane.b32.xlu1 %v444_v56, %s768_s3 }
 0x665   :  { %v455_v55 = vpop.permute.xlu0 %454 }
 0x666   :  { %v453_v53 = vpop.permute.xlu1 %452 }
 0x667   :  { %673 = vmatprep.mubr.msk.f32.mxu1 %vm57_vm0, %v453_v53 }
 0x668   :  { %674 = vmatmul.mubr.msk.f32.vlgmr.msra.gmra.mrb[4].mxu1 %vm57_vm0, %v455_v55  ;;  %vm569_vm0 = vcmask 211968  }
 0x669   :  { %v550_v5 = vpop.permute.xlu0 %549 }
 0x66a   :  { %v548_v6 = vpop.permute.xlu1 %547 }
 0x73b   :  { %v675_v59 = vpop.f32.mrb[4].mxu1 }
 0x73c   :  { %v532_v60 = vadd.f32 %v675_v59, %v449_v58  ;;  %v526_v0 = vpop.f32.mrb[5].mxu1 }
 0x73d   :  { %v527_v1 = vadd.f32 %v526_v0, %v449_v58 }
 0x73e   :  { %751 = vtanh.f32 %v532_v60 }
 0x73f   :  { %753 = vtanh.f32 %v527_v1 }
 0x748   :  { %v752_v2 = vpop.eup %751 }
 0x749   :  { %v754_v4 = vpop.eup %753  ;;  %543 = vrot.lane.b32.xlu0 %v752_v2, %s763_s0 }
 0x74a   :  { %541 = vrot.lane.b32.xlu1 %v754_v4, %s763_s0 }
 0x74d   :  { %557 = vrot.lane.b32.xlu0 %v433_v45, %s769_s10 }
 0x74e   :  { %555 = vrot.lane.b32.xlu1 %v432_v47, %s769_s10 }
 0x7bb   :  { %v544_v3 = vpop.permute.xlu0 %543 }
 0x7bc   :  { %v562_v63 = vsel %vm200_vm9, %v902_v62, %v544_v3  ;;  %v542_v7 = vpop.permute.xlu1 %541 }
 0x7bd   :  { %v565_v8 = vsel %vm563_vm14, %v562_v63, %v544_v3  ;;  %v561_v9 = vsel %vm200_vm9, %v898_v61, %v542_v7 }
 0x7be   :  { %v564_v10 = vsel %vm563_vm14, %v561_v9, %v542_v7  ;;  %v568_v12 = vsel %vm566_vm15, %v565_v8, %v550_v5 }
 0x7bf   :  { %v558_v13 = vpop.permute.xlu0 %557  ;;  %v567_v14 = vsel %vm566_vm15, %v564_v10, %v548_v6 }
 0x7c0   :  { %v571_v15 = vsel %vm569_vm0, %v568_v12, %v558_v13  ;;  %v556_v16 = vpop.permute.xlu1 %555 }
 0x7c1   :  { %v574_v17 = vsel %vm572_vm1, %v571_v15, 0.0  ;;  %v570_v18 = vsel %vm569_vm0, %v567_v14, %v556_v16 }
 0x7c2   :  { %576 = vst [vmem:[%s963_s5 + $0x8] sm:$0xff] %v574_v17  ;;  %v573_v62 = vsel %vm572_vm1, %v570_v18, 0.0 }
 0x7c3   :  { %575 = vst [vmem:[%s963_s5] sm:$0xff] %v573_v62 }

</bundles_post_ra>
